<compile_context>
chip_gen: v5e
topology: v5e:2x2
jax: 0.10.0
libtpu: 0.0.40
codegen_flags: <defaults>
</compile_context>

<pallas_src>
import jax
import jax.numpy as jnp
from jax.experimental import pallas as pl
from jax.experimental.pallas import tpu as pltpu

# ---------------- config (small, consistent with the module) ----------------
B = 8            # batch  (fills f32 sublanes exactly)
L = 16           # input_size == backcast length T
HID = 32         # mlp hidden width  (mlp_units = [[32, 32]])
E = 4            # nr_experts
K = 2            # top_k
H_OUT = 8        # forecast horizon H
F_OUT = 2        # forecast features Fo
NT = L + H_OUT * F_OUT   # n_theta = 32
EPS = 1e-5       # LayerNorm eps (PyTorch default)

EH = E * HID     # 128 (lane-dense hidden width)

# slab layouts
W_ROWS = L + 2 * EH          # 272: [W0 (16) | W1 blockdiag (128) | Wo stacked (128)]
P_ROWS = 56                  # f32 small-param slab rows (all sections 8-row aligned)
R_B0, R_B1, R_BG, R_EXPAND, R_BO, R_WG = 0, 8, 16, 24, 32, 40

TM = 8           # batch tile (== B in this demo; use 1024-4096 for real workloads)


# ---------------- fused kernel: experts + gating + top-k + combine ----------
def moe_fused_kernel(x_ref, w_ref, p_ref, out_ref):
    x = x_ref[...]                                             # [TM, L] f32

    # ---- static slab views (all slices start on sublane-tile boundaries) ----
    w0 = w_ref[0:L, :]                                         # [L, EH]   bf16
    w1 = w_ref[L:L + EH, :]                                    # [EH, EH]  bf16 block-diag
    wo = w_ref[L + EH:L + 2 * EH, :]                           # [EH, 128] bf16 Wo stacked (lanes NT.. = 0)

    b0 = p_ref[R_B0:R_B0 + 1, :]                               # [1, EH]  f32
    b1 = p_ref[R_B1:R_B1 + 1, :]                               # [1, EH]
    bg = p_ref[R_BG:R_BG + 1, 0:E]                             # [1, E]   LN-folded gate bias
    expand = p_ref[R_EXPAND:R_EXPAND + E, :]                   # [E, EH]  one-hot over HID-lane chunks
    bo = p_ref[R_BO:R_BO + E, :]                               # [E, 128] expert output biases (lanes NT.. = 0)
    wg = p_ref[R_WG:R_WG + L, :]                               # [L, 128] LN-folded gate weight (lanes E.. = 0)

    # ---- expert bank: Linear -> Linear -> ReLU for all E experts at once ----
    h = jnp.dot(x.astype(jnp.bfloat16), w0, preferred_element_type=jnp.float32) + b0
    h = jnp.dot(h.astype(jnp.bfloat16), w1, preferred_element_type=jnp.float32) + b1
    h = jnp.maximum(h, 0.0)                                    # [TM, EH] f32

    # ---- gating: LayerNorm (affine folded into wg/bg) + Linear(L -> E) ------
    mean = jnp.mean(x, axis=-1, keepdims=True)
    var = jnp.mean((x - mean) ** 2, axis=-1, keepdims=True)
    z = (x - mean) * jax.lax.rsqrt(var + EPS)                  # [TM, L]
    logits = jnp.dot(z, wg, preferred_element_type=jnp.float32)[:, 0:E] + bg   # [TM, E]

    # ---- top-K (K=2 of E=4) via compare network, lowest-index tie break -----
    lane = jax.lax.broadcasted_iota(jnp.int32, logits.shape, 1)
    rank = jnp.zeros_like(logits)
    for j in range(E):                                         # unrolled, E = 4
        lj = logits[:, j:j + 1]
        beats = jnp.logical_or(lj > logits,
                               jnp.logical_and(lj == logits, j < lane))
        rank = rank + beats.astype(jnp.float32)
    sel = (rank < float(K)).astype(jnp.float32)                # [TM, E]

    # ---- softmax over the selected logits (EUP approx reciprocal) -----------
    masked = jnp.where(sel > 0, logits, -1e30)
    m = jnp.max(masked, axis=-1, keepdims=True)
    p = jnp.exp(masked - m) * sel
    dense_w = p * pl.reciprocal(jnp.sum(p, axis=-1, keepdims=True), approx=True)

    # ---- gate in HIDDEN space: scale each expert's HID-lane chunk of relu(h),
    #      then one stacked-Wo matmul; gate-weighted output bias added on top.
    gate_h = jnp.dot(dense_w, expand, preferred_element_type=jnp.float32)   # [TM, EH]
    hg = (gate_h * h).astype(jnp.bfloat16)
    theta = jnp.dot(hg, wo, preferred_element_type=jnp.float32)             # [TM, 128]
    theta = theta + jnp.dot(dense_w, bo, preferred_element_type=jnp.float32)
    out_ref[...] = theta                                       # lanes 0:NT hold combined theta


@jax.jit
def moe_forward(packed, x):
    btot = x.shape[0]
    assert btot % TM == 0
    out = pl.pallas_call(
        moe_fused_kernel,
        out_shape=jax.ShapeDtypeStruct((btot, 128), jnp.float32),
        grid_spec=pltpu.PrefetchScalarGridSpec(
            num_scalar_prefetch=0,
            grid=(btot // TM,),
            in_specs=[
                pl.BlockSpec((TM, L), lambda i: (i, 0)),          # x batch tile
                pl.BlockSpec((W_ROWS, 128), lambda i: (0, 0)),    # weight slab, VMEM-resident
                pl.BlockSpec((P_ROWS, 128), lambda i: (0, 0)),    # small-param slab, VMEM-resident
            ],
            out_specs=pl.BlockSpec((TM, 128), lambda i: (i, 0)),
        ),
        compiler_params=pltpu.CompilerParams(
            dimension_semantics=("parallel",)),
    )(x, packed["w_slab"], packed["p_slab"])
    backcast = out[:, :L]                                        # [B, L]
    forecast = out[:, L:NT].reshape(btot, H_OUT, F_OUT)          # [B, H, F]
    return backcast, forecast


# ---------------- deterministic parameter init (PyTorch-style uniform) -------
def init_params(key):
    ks = jax.random.split(key, 10)

    def unif(k, shape, fan_in):
        bound = 1.0 / jnp.sqrt(jnp.float32(fan_in))
        return jax.random.uniform(k, shape, jnp.float32, -bound, bound)

    return dict(
        w0=unif(ks[0], (E, L, HID), L),
        b0=unif(ks[1], (E, 1, HID), L),
        w1=unif(ks[2], (E, HID, HID), HID),
        b1=unif(ks[3], (E, 1, HID), HID),
        wo=unif(ks[4], (E, HID, NT), HID),
        bo=unif(ks[5], (E, 1, NT), HID),
        # non-default LayerNorm affine to exercise the LN -> gate-Linear fold
        ln_g=1.0 + 0.1 * jax.random.normal(ks[6], (1, L), jnp.float32),
        ln_b=0.1 * jax.random.normal(ks[7], (1, L), jnp.float32),
        wg=unif(ks[8], (L, E), L),
        bg=unif(ks[9], (1, E), L),
    )


# ---------------- one-time host-side repack into two VMEM slabs --------------
def pack_params(p):
    # bf16 weight slab: [W0 | W1 block-diagonal | Wo block-STACKED lane-padded]
    w0p = jnp.transpose(p["w0"], (1, 0, 2)).reshape(L, EH)            # [L, EH]
    w1p = jnp.zeros((EH, EH), jnp.float32)
    for e in range(E):
        w1p = w1p.at[e * HID:(e + 1) * HID, e * HID:(e + 1) * HID].set(p["w1"][e])
    wop = jnp.pad(p["wo"].reshape(EH, NT), ((0, 0), (0, 128 - NT)))   # [EH, 128]
    w_slab = jnp.concatenate([w0p, w1p, wop], axis=0).astype(jnp.bfloat16)  # [272, 128]

    # f32 small-param slab (every section starts on an 8-row boundary)
    wg_eff = p["ln_g"].reshape(L, 1) * p["wg"]                        # fold LN gamma into Wg
    bg_eff = p["ln_b"].reshape(1, L) @ p["wg"] + p["bg"]              # fold LN beta into bg
    expand = (jnp.arange(EH)[None, :] // HID ==
              jnp.arange(E)[:, None]).astype(jnp.float32)             # [E, EH] one-hot chunks
    q = jnp.zeros((P_ROWS, 128), jnp.float32)
    q = q.at[R_B0, :].set(p["b0"].reshape(EH))
    q = q.at[R_B1, :].set(p["b1"].reshape(EH))
    q = q.at[R_BG, 0:E].set(bg_eff.reshape(E))
    q = q.at[R_EXPAND:R_EXPAND + E, :].set(expand)
    q = q.at[R_BO:R_BO + E, 0:NT].set(p["bo"].reshape(E, NT))
    q = q.at[R_WG:R_WG + L, 0:E].set(wg_eff)
    return dict(w_slab=w_slab, p_slab=q)


# ---------------- pure-JAX mirror of the packed/bf16 kernel math -------------
def reference_packed(packed, x):
    bx = x.shape[0]
    w, q = packed["w_slab"], packed["p_slab"]
    w0, w1, wo = w[0:L], w[L:L + EH], w[L + EH:L + 2 * EH]
    b0, b1 = q[R_B0:R_B0 + 1, :], q[R_B1:R_B1 + 1, :]
    bg = q[R_BG:R_BG + 1, 0:E]
    expand = q[R_EXPAND:R_EXPAND + E, :]
    bo = q[R_BO:R_BO + E, :]
    wg = q[R_WG:R_WG + L, 0:E]

    h = jnp.dot(x.astype(jnp.bfloat16), w0, preferred_element_type=jnp.float32) + b0
    h = jnp.dot(h.astype(jnp.bfloat16), w1, preferred_element_type=jnp.float32) + b1
    h = jnp.maximum(h, 0.0)

    mean = x.mean(-1, keepdims=True)
    var = ((x - mean) ** 2).mean(-1, keepdims=True)
    z = (x - mean) * jax.lax.rsqrt(var + EPS)
    logits = jnp.dot(z, wg, preferred_element_type=jnp.float32) + bg

    tw, ti = jax.lax.top_k(logits, K)
    tw = jax.nn.softmax(tw, axis=1)
    dense_w = jnp.sum(jax.nn.one_hot(ti, E, dtype=jnp.float32) * tw[..., None], axis=1)

    gate_h = jnp.dot(dense_w, expand, preferred_element_type=jnp.float32)
    hg = (gate_h * h).astype(jnp.bfloat16)
    theta = (jnp.dot(hg, wo, preferred_element_type=jnp.float32)
             + jnp.dot(dense_w, bo, preferred_element_type=jnp.float32))
    return theta[:, :L], theta[:, L:NT].reshape(bx, H_OUT, F_OUT)


# ---------------- faithful f32 reference (mirrors the PyTorch forward) -------
def reference(params, x):
    bx = x.shape[0]
    bcs, fcs = [], []
    for e in range(E):
        h = x @ params["w0"][e] + params["b0"][e]
        h = h @ params["w1"][e] + params["b1"][e]
        h = jnp.maximum(h, 0.0)
        theta = h @ params["wo"][e] + params["bo"][e]
        bcs.append(theta[:, :L])
        fcs.append(theta[:, L:].reshape(bx, H_OUT, F_OUT))
    backcasts = jnp.stack(bcs, axis=1)       # [B, E, T]
    forecasts = jnp.stack(fcs, axis=1)       # [B, E, H, F]

    mean = x.mean(-1, keepdims=True)
    var = ((x - mean) ** 2).mean(-1, keepdims=True)
    xn = (x - mean) / jnp.sqrt(var + EPS) * params["ln_g"] + params["ln_b"]
    logits = xn @ params["wg"] + params["bg"]
    tw, ti = jax.lax.top_k(logits, K)
    tw = jax.nn.softmax(tw, axis=1)
    gb = jnp.take_along_axis(backcasts, ti[:, :, None], axis=1)
    gf = jnp.take_along_axis(forecasts, ti[:, :, None, None], axis=1)
    backcast = jnp.sum(tw[:, :, None] * gb, axis=1)
    forecast = jnp.sum(tw[:, :, None, None] * gf, axis=1)
    return backcast, forecast


if __name__ == "__main__":
    key = jax.random.PRNGKey(0)
    pkey, xkey = jax.random.split(key)
    params = init_params(pkey)
    packed = pack_params(params)
    x = jax.random.normal(xkey, (B, L), jnp.float32)   # insample_y

    backcast, forecast = moe_forward(packed, x)
    backcast = jax.block_until_ready(backcast)
    forecast = jax.block_until_ready(forecast)
    assert backcast.shape == (B, L) and forecast.shape == (B, H_OUT, F_OUT)

    # (1) tight check against a pure-JAX mirror of the packed bf16 kernel math
    #     (tolerance covers the approx EUP reciprocal + MXU accumulation order)
    bc_q, fc_q = reference_packed(packed, x)
    assert jnp.allclose(backcast, bc_q, atol=5e-3, rtol=5e-3)
    assert jnp.allclose(forecast, fc_q, atol=5e-3, rtol=5e-3)

    # (2) semantic check against the f32 PyTorch-equivalent forward
    #     (looser tolerance due to bf16 matmul-weight quantization)
    bc_ref, fc_ref = reference(params, x)
    assert jnp.allclose(backcast, bc_ref, atol=3e-2, rtol=3e-2)
    assert jnp.allclose(forecast, fc_ref, atol=3e-2, rtol=3e-2)
    print("KERNEL_OK")
</pallas_src>

<mosaic_0001>
module attributes {stable_mosaic.version = 11 : i64} {
  func.func @moe_fused_kernel(%arg0: i32, %arg1: memref<8x16xf32, #tpu.memory_space<vmem>>, %arg2: memref<272x128xbf16, #tpu.memory_space<vmem>>, %arg3: memref<56x128xf32, #tpu.memory_space<vmem>>, %arg4: memref<8x128xf32, #tpu.memory_space<vmem>>) attributes {dimension_semantics = [#tpu.dimension_semantics<parallel>], iteration_bounds = array<i64: 1>, scalar_prefetch = 0 : i64, scratch_operands = 0 : i64, tpu.core_type = #tpu.core_type<tc>, window_params = [{transform_indices = @transform_0, window_bounds = array<i64: 8, 16>}, {pipeline_mode = #tpu.pipeline_mode<synchronous>, transform_indices = @transform_1, window_bounds = array<i64: 272, 128>}, {pipeline_mode = #tpu.pipeline_mode<synchronous>, transform_indices = @transform_2, window_bounds = array<i64: 56, 128>}, {transform_indices = @transform_3, window_bounds = array<i64: 8, 128>}]} {
    %c0 = arith.constant 0 : index
    %c0_0 = arith.constant 0 : index
    %0 = vector.load %arg1[%c0, %c0_0] : memref<8x16xf32, #tpu.memory_space<vmem>>, vector<8x16xf32>
    %c0_1 = arith.constant 0 : index
    %c0_2 = arith.constant 0 : index
    %1 = vector.load %arg2[%c0_1, %c0_2] : memref<272x128xbf16, #tpu.memory_space<vmem>>, vector<16x128xbf16>
    %c16 = arith.constant 16 : index
    %c0_3 = arith.constant 0 : index
    %2 = vector.load %arg2[%c16, %c0_3] : memref<272x128xbf16, #tpu.memory_space<vmem>>, vector<128x128xbf16>
    %c144 = arith.constant 144 : index
    %c0_4 = arith.constant 0 : index
    %3 = vector.load %arg2[%c144, %c0_4] : memref<272x128xbf16, #tpu.memory_space<vmem>>, vector<128x128xbf16>
    %c0_5 = arith.constant 0 : index
    %c0_6 = arith.constant 0 : index
    %4 = vector.load %arg3[%c0_5, %c0_6] : memref<56x128xf32, #tpu.memory_space<vmem>>, vector<1x128xf32>
    %c8 = arith.constant 8 : index
    %c0_7 = arith.constant 0 : index
    %5 = vector.load %arg3[%c8, %c0_7] : memref<56x128xf32, #tpu.memory_space<vmem>>, vector<1x128xf32>
    %c16_8 = arith.constant 16 : index
    %c0_9 = arith.constant 0 : index
    %6 = vector.load %arg3[%c16_8, %c0_9] : memref<56x128xf32, #tpu.memory_space<vmem>>, vector<1x4xf32>
    %c24 = arith.constant 24 : index
    %c0_10 = arith.constant 0 : index
    %7 = vector.load %arg3[%c24, %c0_10] : memref<56x128xf32, #tpu.memory_space<vmem>>, vector<4x128xf32>
    %c32 = arith.constant 32 : index
    %c0_11 = arith.constant 0 : index
    %8 = vector.load %arg3[%c32, %c0_11] : memref<56x128xf32, #tpu.memory_space<vmem>>, vector<4x128xf32>
    %c40 = arith.constant 40 : index
    %c0_12 = arith.constant 0 : index
    %9 = vector.load %arg3[%c40, %c0_12] : memref<56x128xf32, #tpu.memory_space<vmem>>, vector<16x128xf32>
    %10 = arith.truncf %0 : vector<8x16xf32> to vector<8x16xbf16>
    %cst = arith.constant dense<0.000000e+00> : vector<8x128xf32>
    %11 = tpu.matmul %10, %1, %cst {dimension_numbers = #tpu.dot_dimension_numbers<[1], [0], [0], [1], [0, 0, 1, 1], [], []>} : vector<8x16xbf16>, vector<16x128xbf16>, vector<8x128xf32> -> vector<8x128xf32>
    %12 = vector.broadcast %4 : vector<1x128xf32> to vector<8x128xf32>
    %13 = arith.addf %11, %12 : vector<8x128xf32>
    %14 = arith.truncf %13 : vector<8x128xf32> to vector<8x128xbf16>
    %cst_13 = arith.constant dense<0.000000e+00> : vector<8x128xf32>
    %15 = tpu.matmul %14, %2, %cst_13 {dimension_numbers = #tpu.dot_dimension_numbers<[1], [0], [0], [1], [0, 0, 1, 1], [], []>} : vector<8x128xbf16>, vector<128x128xbf16>, vector<8x128xf32> -> vector<8x128xf32>
    %16 = vector.broadcast %5 : vector<1x128xf32> to vector<8x128xf32>
    %17 = arith.addf %15, %16 : vector<8x128xf32>
    %cst_14 = arith.constant 0.000000e+00 : f32
    %18 = vector.broadcast %cst_14 : f32 to vector<8x128xf32>
    %19 = arith.maximumf %17, %18 : vector<8x128xf32>
    %cst_15 = arith.constant dense<0.000000e+00> : vector<8xf32>
    %20 = vector.multi_reduction <add>, %0, %cst_15 [1] : vector<8x16xf32> to vector<8xf32>
    %21 = vector.shape_cast %20 : vector<8xf32> to vector<8x1xf32>
    %cst_16 = arith.constant 1.600000e+01 : f32
    %22 = vector.broadcast %cst_16 : f32 to vector<8x1xf32>
    %23 = arith.divf %21, %22 : vector<8x1xf32>
    %24 = vector.broadcast %23 : vector<8x1xf32> to vector<8x16xf32>
    %25 = arith.subf %0, %24 : vector<8x16xf32>
    %26 = arith.mulf %25, %25 : vector<8x16xf32>
    %cst_17 = arith.constant dense<0.000000e+00> : vector<8xf32>
    %27 = vector.multi_reduction <add>, %26, %cst_17 [1] : vector<8x16xf32> to vector<8xf32>
    %28 = vector.shape_cast %27 : vector<8xf32> to vector<8x1xf32>
    %cst_18 = arith.constant 1.600000e+01 : f32
    %29 = vector.broadcast %cst_18 : f32 to vector<8x1xf32>
    %30 = arith.divf %28, %29 : vector<8x1xf32>
    %31 = vector.broadcast %23 : vector<8x1xf32> to vector<8x16xf32>
    %32 = arith.subf %0, %31 : vector<8x16xf32>
    %cst_19 = arith.constant 9.99999974E-6 : f32
    %33 = vector.broadcast %cst_19 : f32 to vector<8x1xf32>
    %34 = arith.addf %30, %33 : vector<8x1xf32>
    %35 = math.rsqrt %34 : vector<8x1xf32>
    %36 = vector.broadcast %35 : vector<8x1xf32> to vector<8x16xf32>
    %37 = arith.mulf %32, %36 : vector<8x16xf32>
    %cst_20 = arith.constant dense<0.000000e+00> : vector<8x128xf32>
    %38 = tpu.matmul %37, %9, %cst_20 {dimension_numbers = #tpu.dot_dimension_numbers<[1], [0], [0], [1], [0, 0, 1, 1], [], []>} : vector<8x16xf32>, vector<16x128xf32>, vector<8x128xf32> -> vector<8x128xf32>
    %39 = vector.extract_strided_slice %38 {offsets = [0, 0], sizes = [8, 4], strides = [1, 1]} : vector<8x128xf32> to vector<8x4xf32>
    %40 = vector.broadcast %6 : vector<1x4xf32> to vector<8x4xf32>
    %41 = arith.addf %39, %40 : vector<8x4xf32>
    %42 = tpu.iota {dimensions = array<i32: 1>} : vector<8x4xi32>
    %cst_21 = arith.constant 0.000000e+00 : f32
    %43 = vector.broadcast %cst_21 : f32 to vector<8x4xf32>
    %44 = vector.extract_strided_slice %41 {offsets = [0, 0], sizes = [8, 1], strides = [1, 1]} : vector<8x4xf32> to vector<8x1xf32>
    %45 = vector.broadcast %44 : vector<8x1xf32> to vector<8x4xf32>
    %46 = arith.cmpf ogt, %45, %41 : vector<8x4xf32>
    %47 = vector.broadcast %44 : vector<8x1xf32> to vector<8x4xf32>
    %48 = arith.cmpf oeq, %47, %41 : vector<8x4xf32>
    %c0_i32 = arith.constant 0 : i32
    %49 = vector.broadcast %c0_i32 : i32 to vector<8x4xi32>
    %50 = arith.cmpi sgt, %42, %49 : vector<8x4xi32>
    %51 = arith.andi %48, %50 : vector<8x4xi1>
    %52 = arith.ori %46, %51 : vector<8x4xi1>
    %53 = arith.extui %52 : vector<8x4xi1> to vector<8x4xi32>
    %54 = arith.sitofp %53 : vector<8x4xi32> to vector<8x4xf32>
    %55 = arith.addf %43, %54 : vector<8x4xf32>
    %56 = vector.extract_strided_slice %41 {offsets = [0, 1], sizes = [8, 1], strides = [1, 1]} : vector<8x4xf32> to vector<8x1xf32>
    %57 = vector.broadcast %56 : vector<8x1xf32> to vector<8x4xf32>
    %58 = arith.cmpf ogt, %57, %41 : vector<8x4xf32>
    %59 = vector.broadcast %56 : vector<8x1xf32> to vector<8x4xf32>
    %60 = arith.cmpf oeq, %59, %41 : vector<8x4xf32>
    %c1_i32 = arith.constant 1 : i32
    %61 = vector.broadcast %c1_i32 : i32 to vector<8x4xi32>
    %62 = arith.cmpi sgt, %42, %61 : vector<8x4xi32>
    %63 = arith.andi %60, %62 : vector<8x4xi1>
    %64 = arith.ori %58, %63 : vector<8x4xi1>
    %65 = arith.extui %64 : vector<8x4xi1> to vector<8x4xi32>
    %66 = arith.sitofp %65 : vector<8x4xi32> to vector<8x4xf32>
    %67 = arith.addf %55, %66 : vector<8x4xf32>
    %68 = vector.extract_strided_slice %41 {offsets = [0, 2], sizes = [8, 1], strides = [1, 1]} : vector<8x4xf32> to vector<8x1xf32>
    %69 = vector.broadcast %68 : vector<8x1xf32> to vector<8x4xf32>
    %70 = arith.cmpf ogt, %69, %41 : vector<8x4xf32>
    %71 = vector.broadcast %68 : vector<8x1xf32> to vector<8x4xf32>
    %72 = arith.cmpf oeq, %71, %41 : vector<8x4xf32>
    %c2_i32 = arith.constant 2 : i32
    %73 = vector.broadcast %c2_i32 : i32 to vector<8x4xi32>
    %74 = arith.cmpi sgt, %42, %73 : vector<8x4xi32>
    %75 = arith.andi %72, %74 : vector<8x4xi1>
    %76 = arith.ori %70, %75 : vector<8x4xi1>
    %77 = arith.extui %76 : vector<8x4xi1> to vector<8x4xi32>
    %78 = arith.sitofp %77 : vector<8x4xi32> to vector<8x4xf32>
    %79 = arith.addf %67, %78 : vector<8x4xf32>
    %80 = vector.extract_strided_slice %41 {offsets = [0, 3], sizes = [8, 1], strides = [1, 1]} : vector<8x4xf32> to vector<8x1xf32>
    %81 = vector.broadcast %80 : vector<8x1xf32> to vector<8x4xf32>
    %82 = arith.cmpf ogt, %81, %41 : vector<8x4xf32>
    %83 = vector.broadcast %80 : vector<8x1xf32> to vector<8x4xf32>
    %84 = arith.cmpf oeq, %83, %41 : vector<8x4xf32>
    %c3_i32 = arith.constant 3 : i32
    %85 = vector.broadcast %c3_i32 : i32 to vector<8x4xi32>
    %86 = arith.cmpi sgt, %42, %85 : vector<8x4xi32>
    %87 = arith.andi %84, %86 : vector<8x4xi1>
    %88 = arith.ori %82, %87 : vector<8x4xi1>
    %89 = arith.extui %88 : vector<8x4xi1> to vector<8x4xi32>
    %90 = arith.sitofp %89 : vector<8x4xi32> to vector<8x4xf32>
    %91 = arith.addf %79, %90 : vector<8x4xf32>
    %cst_22 = arith.constant 2.000000e+00 : f32
    %92 = vector.broadcast %cst_22 : f32 to vector<8x4xf32>
    %93 = arith.cmpf olt, %91, %92 : vector<8x4xf32>
    %94 = arith.extui %93 : vector<8x4xi1> to vector<8x4xi32>
    %95 = arith.sitofp %94 : vector<8x4xi32> to vector<8x4xf32>
    %cst_23 = arith.constant 0.000000e+00 : f32
    %96 = vector.broadcast %cst_23 : f32 to vector<8x4xf32>
    %97 = arith.cmpf ogt, %95, %96 : vector<8x4xf32>
    %cst_24 = arith.constant -1.000000e+30 : f32
    %98 = vector.broadcast %cst_24 : f32 to vector<8x4xf32>
    %99 = arith.select %97, %41, %98 : vector<8x4xi1>, vector<8x4xf32>
    %cst_25 = arith.constant dense<0xFF800000> : vector<8xf32>
    %100 = vector.multi_reduction <maximumf>, %99, %cst_25 [1] : vector<8x4xf32> to vector<8xf32>
    %101 = vector.shape_cast %100 : vector<8xf32> to vector<8x1xf32>
    %102 = vector.broadcast %101 : vector<8x1xf32> to vector<8x4xf32>
    %103 = arith.subf %99, %102 : vector<8x4xf32>
    %104 = math.exp %103 : vector<8x4xf32>
    %105 = arith.mulf %104, %95 : vector<8x4xf32>
    %cst_26 = arith.constant dense<0.000000e+00> : vector<8xf32>
    %106 = vector.multi_reduction <add>, %105, %cst_26 [1] : vector<8x4xf32> to vector<8xf32>
    %107 = vector.shape_cast %106 : vector<8xf32> to vector<8x1xf32>
    %108 = tpu.reciprocal %107 {approx = true} : vector<8x1xf32> -> vector<8x1xf32>
    %109 = vector.broadcast %108 : vector<8x1xf32> to vector<8x4xf32>
    %110 = arith.mulf %105, %109 : vector<8x4xf32>
    %cst_27 = arith.constant dense<0.000000e+00> : vector<8x128xf32>
    %111 = tpu.matmul %110, %7, %cst_27 {dimension_numbers = #tpu.dot_dimension_numbers<[1], [0], [0], [1], [0, 0, 1, 1], [], []>} : vector<8x4xf32>, vector<4x128xf32>, vector<8x128xf32> -> vector<8x128xf32>
    %112 = arith.mulf %111, %19 : vector<8x128xf32>
    %113 = arith.truncf %112 : vector<8x128xf32> to vector<8x128xbf16>
    %cst_28 = arith.constant dense<0.000000e+00> : vector<8x128xf32>
    %114 = tpu.matmul %113, %3, %cst_28 {dimension_numbers = #tpu.dot_dimension_numbers<[1], [0], [0], [1], [0, 0, 1, 1], [], []>} : vector<8x128xbf16>, vector<128x128xbf16>, vector<8x128xf32> -> vector<8x128xf32>
    %cst_29 = arith.constant dense<0.000000e+00> : vector<8x128xf32>
    %115 = tpu.matmul %110, %8, %cst_29 {dimension_numbers = #tpu.dot_dimension_numbers<[1], [0], [0], [1], [0, 0, 1, 1], [], []>} : vector<8x4xf32>, vector<4x128xf32>, vector<8x128xf32> -> vector<8x128xf32>
    %116 = arith.addf %114, %115 : vector<8x128xf32>
    %c0_30 = arith.constant 0 : index
    %c0_31 = arith.constant 0 : index
    %117 = vector.load %arg4[%c0_30, %c0_31] : memref<8x128xf32, #tpu.memory_space<vmem>>, vector<8x128xf32>
    tpu.vector_store %arg4[%c0_30, %c0_31], %116 {strides = array<i32>} : memref<8x128xf32, #tpu.memory_space<vmem>>, vector<8x128xf32>,
    return
  }
  func.func @transform_0(%arg0: i32) -> (i32, i32) {
    %c0_i32 = arith.constant 0 : i32
    %c0_i32_0 = arith.constant 0 : i32
    return %arg0, %c0_i32 : i32, i32
  }
  func.func @transform_1(%arg0: i32) -> (i32, i32) {
    %c0_i32 = arith.constant 0 : i32
    %c0_i32_0 = arith.constant 0 : i32
    %c0_i32_1 = arith.constant 0 : i32
    return %c0_i32, %c0_i32_0 : i32, i32
  }
  func.func @transform_2(%arg0: i32) -> (i32, i32) {
    %c0_i32 = arith.constant 0 : i32
    %c0_i32_0 = arith.constant 0 : i32
    %c0_i32_1 = arith.constant 0 : i32
    return %c0_i32, %c0_i32_0 : i32, i32
  }
  func.func @transform_3(%arg0: i32) -> (i32, i32) {
    %c0_i32 = arith.constant 0 : i32
    %c0_i32_0 = arith.constant 0 : i32
    return %arg0, %c0_i32 : i32, i32
  }
}

</mosaic_0001>

<bundles_post_ra>
// kernel: moe_forward.1
= control target key start
LH: loop header
LB: loop body
LE: loop exit
PB: predicated region body
PF: predicated region fallthrough
CT: control target
= control target key end

     0   :  { %8 = vsyncpa [#allocation3], 0  ;;  %s691_s0 = inlined_call_operand.hbm [shape: f32[8,16], index: 0, kind: input, shape index: {}]   ;;  %s692_s1 = inlined_call_operand.hbm [shape: bf16[272,128], index: 1, kind: input, shape index: {}]   ;;  %s693_s2 = inlined_call_operand.hbm [shape: f32[56,128], index: 2, kind: input, shape index: {}]   ;;  %s694_s3 = inlined_call_operand.vmem [shape: f32[8,128], index: 3, kind: output, shape index: {}]  }
   0x1   :  { %9 = vsyncpa [#allocation5], 0  ;;  %s25_s14 = sshll.u32 %s692_s1, 4  ;;  %s635_s15 = smov [#allocation4]   ;;  %s26_s14 = int_to_ptr.hbm [resolvable:$true] %s25_s14 }
   0x2   :  { %s27_s16 = sshll.u32 %s635_s15, 4  ;;  %s15_s19 = sshll.u32 %s691_s0, 4  ;;  %s28_s16 = int_to_ptr.vmem [resolvable:$true] %s27_s16  ;;  %s16_s19 = int_to_ptr.hbm [resolvable:$true] %s15_s19 }
   0x3   :  { %s636_s20 = smov 64   ;;  %s637_s21 = smov 4  }
   0x4   :  { %33 = dma.hbm_to_vmem [thread:$0]  %s26_s14, 2176, %s28_s16, [#allocation5], %s636_s20, %s636_s20, %s637_s21  }
   0x5   :  { %s638_s22 = smov [#allocation2]   ;;  %s38_s26 = sshll.u32 %s693_s2, 4  ;;  %s39_s26 = int_to_ptr.hbm [resolvable:$true] %s38_s26 }
   0x6   :  { %s17_s23 = sshll.u32 %s638_s22, 4  ;;  %s639_s1 = smov [#allocation6]   ;;  %s18_s23 = int_to_ptr.vmem [resolvable:$true] %s17_s23 }
   0x7   :  { %20 = dma.hbm_to_vmem [thread:$0]  %s16_s19, 128, %s18_s23, [#allocation3]  }
   0x8   :  { %s40_s27 = sshll.u32 %s639_s1, 4  ;;  %s640_s28 = smov 128   ;;  %s41_s27 = int_to_ptr.vmem [resolvable:$true] %s40_s27 }
   0x9   :  { %s641_s29 = smov 8  }
   0xa   :  { %46 = dma.hbm_to_vmem [thread:$0]  %s39_s26, 896, %s41_s27, [#allocation5], %s640_s28, %s640_s28, %s641_s29  }
   0xb   :  { %631 = dma.done.wait [#allocation3], 128  }
   0xc   :  { %632 = vsyncadd [#allocation3], 4294967168 }
   0xd   :  { %633 = dma.done.wait [#allocation5], 3072  }
   0xe   :  { %634 = vsyncadd [#allocation5], 4294964224  ;;  %vm110_vm0 = vcmask 130048   ;;  %v60_v0 = vld [vmem:[#allocation2] sm:$0xff]  ;;  %v642_v2 = vmov 16.0   ;;  %v513_v3 = vld [vmem:[#allocation4] sm:$0xff]  ;;  %v245_v52 = vlaneseq }
   0xf   :  { %v191_v1 = vsel %vm110_vm0, %v60_v0, 0.0  ;;  %551 = vrcp.f32 %v642_v2  ;;  %121 = vmatpush.bf16.msra.mxu2 %v513_v3  ;;  %v102_v15 = vpack.c.bf16 %v60_v0, %v60_v0  ;;  %v101_v16 = vld [vmem:[#allocation6 + $0x30] sm:$0xff]  ;;  %v100_v17 = vld [vmem:[#allocation6 + $0x28] sm:$0xff]  ;;  %v521_v18 = vld [vmem:[#allocation4 + $0x40] sm:$0xff]  ;;  %v643_v42 = vmov 2  }
  0x10   :  { %192 = vadd.xlane.f32.xlu0 %v191_v1  ;;  %177 = vmatpush.bf16.msra.mxu1 %v521_v18  ;;  %v520_v19 = vld [vmem:[#allocation4 + $0x38] sm:$0xff]  ;;  %v519_v20 = vld [vmem:[#allocation4 + $0x30] sm:$0xff]  ;;  %v518_v24 = vld [vmem:[#allocation4 + $0x28] sm:$0xff]  ;;  %v644_v43 = vmov 0   ;;  %v645_v44 = vmov 3   ;;  %v646_v48 = vmov 1  }
  0x11   :  { %v517_v25 = vld [vmem:[#allocation4 + $0x20] sm:$0xff]  ;;  %v516_v27 = vld [vmem:[#allocation4 + $0x18] sm:$0xff]  ;;  %v515_v30 = vld [vmem:[#allocation4 + $0x10] sm:$0xff]  ;;  %545 = vset.pattern.permute.xlu2 %v643_v42  ;;  %543 = vset.pattern.permute.xlu1 %v644_v43  ;;  %v246_v53 = vand.u32 127, %v245_v52  ;;  %v647_v57 = vmov 0.0  }
  0x12   :  { %438 = vmatmul.msk.bf16.vlgmr.msra.gmra.mxu2 %vm110_vm0, %v102_v15  ;;  %v514_v36 = vld [vmem:[#allocation4 + $0x8] sm:$0xff]  ;;  %547 = vset.pattern.permute.xlu0 %v645_v44  ;;  %v549_v45 = vld [vmem:[#allocation6 + $0x10] ss:$0 sm:$0xff] }
  0x13   :  { %237 = vmatpush.msrb.mxu2 %v101_v16  ;;  %v548_v37 = vld [vmem:[#allocation6] ss:$0 sm:$0xff]  ;;  %vm278_vm5 = vcmp.gt.s32.totalorder %v246_v53, 2  ;;  %vm254_vm7 = vcmp.gt.s32.totalorder %v246_v53, 0  ;;  %vm290_vm11 = vcmp.gt.s32.totalorder %v246_v53, 3  ;;  %v524_v18 = vld [vmem:[#allocation4 + $0x58] sm:$0xff] }
  0x14   :  { %178 = vmatpush.bf16.msra.mxu1 %v520_v19  ;;  %v526_v15 = vld [vmem:[#allocation4 + $0x68] sm:$0xff] }
  0x15   :  { %v552_v4 = vpop.eup %551  ;;  %238 = vmatpush.msrb.mxu2 %v100_v17  ;;  %v525_v17 = vld [vmem:[#allocation4 + $0x60] sm:$0xff] }
  0x16   :  { %v195_v5 = vmul.f32 16.0, %v552_v4  ;;  %vm199_vm1 = vweird.f32 %v552_v4 }
  0x18   :  { %v196_v6 = vsub.f32 1.0, %v195_v5  ;;  %179 = vmatpush.bf16.msra.mxu1 %v519_v20 }
  0x1a   :  { %v197_v7 = vmul.f32 %v552_v4, %v196_v6 }
  0x1c   :  { %v198_v8 = vadd.f32 %v552_v4, %v197_v7  ;;  %180 = vmatpush.bf16.msra.mxu1 %v518_v24 }
  0x1e   :  { %v200_v9 = vsel %vm199_vm1, %v552_v4, %v198_v8 }
  0x20   :  { %181 = vmatpush.bf16.msra.mxu1 %v517_v25 }
  0x24   :  { %182 = vmatpush.bf16.msra.mxu1 %v516_v27 }
  0x28   :  { %183 = vmatpush.bf16.msra.mxu1 %v515_v30 }
  0x2c   :  { %184 = vmatpush.bf16.msra.mxu1 %v514_v36 }
  0x83   :  { %v193_v10 = vpop.xlane.xlu0 %192 }
  0x84   :  { %v201_v11 = vmul.f32 %v200_v9, %v193_v10  ;;  %v98_v10 = vld [vmem:[#allocation6 + $0x18] sm:$0xf] }
  0x86   :  { %v202_v12 = vsub.f32 %v60_v0, %v201_v11  ;;  %v99_v11 = vld [vmem:[#allocation6 + $0x20] sm:$0xf] }
  0x88   :  { %v203_v13 = vmul.f32 %v202_v12, %v202_v12 }
  0x8a   :  { %v204_v14 = vsel %vm110_vm0, %v203_v13, 0.0  ;;  %v528_v13 = vld [vmem:[#allocation4 + $0x78] sm:$0xff] }
  0x8b   :  { %205 = vadd.xlane.f32.xlu0 %v204_v14  ;;  %v527_v14 = vld [vmem:[#allocation4 + $0x70] sm:$0xff] }
  0x95   :  { %v123_v38 = vpop.f32.mrf.mxu2 }
  0x96   :  { %v124_v39 = vadd.f32 %v548_v37, %v123_v38 }
  0x98   :  { %v127_v40 = vpack.c.bf16 %v124_v39, %v124_v39 }
  0x9a   :  { %185 = vmatmul.bf16.vlgmr.msra.gmra.mxu1 %v127_v40 }
  0x9d   :  { %v125_v41 = vpop.f32.mrf.mxu2 }
  0xfe   :  { %v206_v21 = vpop.xlane.xlu0 %205 }
  0xff   :  { %v207_v22 = vmul.f32 %v206_v21, %v200_v9  ;;  %v523_v21 = vld [vmem:[#allocation4 + $0x50] sm:$0xff] }
 0x101   :  { %v208_v23 = vadd.f32 1e-05, %v207_v22  ;;  %v522_v22 = vld [vmem:[#allocation4 + $0x48] sm:$0xff] }
 0x103   :  { %553 = vrsqrt.f32 %v208_v23  ;;  %vm215_vm3 = vweird.f32 %v208_v23 }
 0x109   :  { %v554_v26 = vpop.eup %553 }
 0x10a   :  { %v210_v28 = vmul.f32 %v554_v26, %v208_v23  ;;  %vm216_vm2 = vweird.f32 %v554_v26  ;;  %v550_v23 = vld [vmem:[#allocation6 + $0x8] ss:$0 sm:$0xff] }
 0x10b   :  { %vm217_vm4 = vmor %vm215_vm3, %vm216_vm2 }
 0x10c   :  { %v211_v29 = vmul.f32 %v554_v26, %v210_v28 }
 0x10e   :  { %v212_v31 = vmul.f32 0.5, %v211_v29 }
 0x110   :  { %v213_v32 = vsub.f32 1.5, %v212_v31 }
 0x112   :  { %v214_v33 = vmul.f32 %v554_v26, %v213_v32 }
 0x114   :  { %v218_v34 = vsel %vm217_vm4, %v554_v26, %v214_v33 }
 0x115   :  { %v219_v35 = vmul.f32 %v218_v34, %v202_v12  ;;  %v529_v12 = vld [vmem:[#allocation4 + $0x80] sm:$0xff] }
 0x116   :  { %414 = vmatpush.bf16.msra.mxu0 %v529_v12 }
 0x117   :  { %471 = vmatmul.msk.f32.vlgmr.msrb.gmra.mxu2 %vm110_vm0, %v219_v35  ;;  %v681_v49 = vpop.f32.mrf.mxu1  ;;  %vm266_vm0 = vcmp.gt.s32.totalorder %v246_v53, 1 }
 0x118   :  { %v187_v24 = vadd.f32 %v550_v23, %v681_v49 }
 0x11a   :  { %415 = vmatpush.bf16.msra.mxu0 %v528_v13  ;;  %v190_v25 = vmax.f32 %v187_v24, 0.0 }
 0x11e   :  { %416 = vmatpush.bf16.msra.mxu0 %v527_v14 }
 0x11f   :  { %v188_v50 = vpop.f32.mrf.mxu1 }
 0x122   :  { %417 = vmatpush.bf16.msra.mxu0 %v526_v15 }
 0x126   :  { %418 = vmatpush.bf16.msra.mxu0 %v525_v17 }
 0x12a   :  { %419 = vmatpush.bf16.msra.mxu0 %v524_v18 }
 0x12e   :  { %420 = vmatpush.bf16.msra.mxu0 %v523_v21 }
 0x132   :  { %421 = vmatpush.bf16.msra.mxu0 %v522_v22 }
 0x19a   :  { %v240_v46 = vpop.f32.mrf.mxu2 }
 0x19b   :  { %v244_v47 = vadd.f32 %v549_v45, %v240_v46 }
 0x19d   :  { %273 = vperm.xlu2 %545, %v244_v47   ;;  %249 = vperm.xlu1 %543, %v244_v47  }
 0x1a5   :  { %546 = vset.pattern.permute.xlu2 %v645_v44  ;;  %544 = vset.pattern.permute.xlu1 %v646_v48 }
 0x1a6   :  { %285 = vperm.xlu2 %546, %v244_v47   ;;  %261 = vperm.xlu1 %544, %v244_v47  }
 0x1f7   :  { %v274_v51 = vpop.permute.xlu2 %273 }
 0x1f8   :  { %vm277_vm6 = vcmp.eq.f32.partialorder %v274_v51, %v244_v47  ;;  %vm276_vm9 = vcmp.gt.f32.partialorder %v274_v51, %v244_v47 }
 0x1f9   :  { %vm279_vm10 = vmand %vm277_vm6, %vm278_vm5 }
 0x1fa   :  { %vm280_vm15 = vmor %vm276_vm9, %vm279_vm10  ;;  %vm301_vm10 = vcmask 31744  }
 0x1fb   :  { %v474_v61 = vsel %vm280_vm15, 1.0, %v647_v57 }
 0x200   :  { %v286_v55 = vpop.permute.xlu2 %285 }
 0x201   :  { %vm289_vm12 = vcmp.eq.f32.partialorder %v286_v55, %v244_v47  ;;  %vm288_vm5 = vcmp.gt.f32.partialorder %v286_v55, %v244_v47 }
 0x202   :  { %vm291_vm1 = vmand %vm289_vm12, %vm290_vm11  ;;  %vm317_vm12 = vcmask 1043456  }
 0x203   :  { %477 = vmatpush.msk.msra.mxu3 %vm317_vm12, %v98_v10 }
 0x205   :  { %479 = vmatpush.msk.msrb.mxu3 %vm317_vm12, %v99_v11 }
 0x20f   :  { %v250_v54 = vpop.permute.xlu1 %249 }
 0x210   :  { %vm253_vm8 = vcmp.eq.f32.partialorder %v250_v54, %v244_v47  ;;  %vm252_vm13 = vcmp.gt.f32.partialorder %v250_v54, %v244_v47 }
 0x211   :  { %vm255_vm14 = vmand %vm253_vm8, %vm254_vm7 }
 0x212   :  { %vm256_vm2 = vmor %vm252_vm13, %vm255_vm14 }
 0x213   :  { %v472_v58 = vsel %vm256_vm2, 1.0, %v647_v57  ;;  %vm292_vm8 = vmor %vm288_vm5, %vm291_vm1 }
 0x214   :  { %v475_v63 = vsel %vm292_vm8, 1.0, %v647_v57 }
 0x218   :  { %v262_v56 = vpop.permute.xlu1 %261 }
 0x219   :  { %vm264_vm3 = vcmp.gt.f32.partialorder %v262_v56, %v244_v47  ;;  %vm265_vm4 = vcmp.eq.f32.partialorder %v262_v56, %v244_v47 }
 0x21a   :  { %vm267_vm6 = vmand %vm265_vm4, %vm266_vm0 }
 0x21b   :  { %vm268_vm7 = vmor %vm264_vm3, %vm267_vm6 }
 0x21c   :  { %v473_v59 = vsel %vm268_vm7, 1.0, %v647_v57 }
 0x21d   :  { %v271_v60 = vadd.f32 %v473_v59, %v472_v58 }
 0x21f   :  { %v283_v62 = vadd.f32 %v474_v61, %v271_v60 }
 0x221   :  { %v295_v0 = vadd.f32 %v475_v63, %v283_v62 }
 0x223   :  { %vm296_vm9 = vcmp.lt.f32.partialorder %v295_v0, 2.0 }
 0x224   :  { %v476_v1 = vsel %vm296_vm9, 1.0, %v647_v57 }
 0x225   :  { %vm299_vm11 = vcmp.gt.f32.partialorder %v476_v1, 0.0 }
 0x226   :  { %v300_v2 = vsel %vm299_vm11, %v244_v47, -1e+30 }
 0x227   :  { %v302_v3 = vsel %vm301_vm10, %v300_v2, -inf }
 0x228   :  { %303 = vmax.xlane.f32.xlu0 %v302_v3 }
 0x29b   :  { %v304_v4 = vpop.xlane.xlu0 %303 }
 0x29c   :  { %v305_v5 = vsub.f32 %v300_v2, %v304_v4 }
 0x29e   :  { %v306_v6 = vmul.f32 1.442695, %v305_v5 }
 0x2a0   :  { %555 = vpow2.f32 %v306_v6 }
 0x2a6   :  { %v556_v7 = vpop.eup %555 }
 0x2a7   :  { %v308_v8 = vmul.f32 %v556_v7, %v476_v1 }
 0x2a9   :  { %v309_v9 = vsel %vm301_vm10, %v308_v8, 0.0 }
 0x2aa   :  { %310 = vadd.xlane.f32.xlu1 %v309_v9 }
 0x31d   :  { %v311_v16 = vpop.xlane.xlu1 %310 }
 0x31e   :  { %557 = vrcp.f32 %v311_v16 }
 0x324   :  { %v558_v19 = vpop.eup %557 }
 0x325   :  { %v313_v20 = vmul.f32 %v558_v19, %v308_v8 }
 0x327   :  { %478 = vmatmul.msk.f32.vlgmr.msra.gmra.mxu3 %vm301_vm10, %v313_v20 }
 0x32f   :  { %480 = vmatmul.msk.f32.vlgmr.msrb.gmra.mxu3 %vm301_vm10, %v313_v20 }
 0x3aa   :  { %v338_v26 = vpop.f32.mrf.mxu3 }
 0x3ab   :  { %v341_v27 = vmul.f32 %v338_v26, %v190_v25 }
 0x3ad   :  { %v342_v28 = vpack.c.bf16 %v341_v27, %v341_v27 }
 0x3af   :  { %422 = vmatmul.bf16.vlgmr.msra.gmra.mxu0 %v342_v28 }
 0x3b2   :  { %v363_v29 = vpop.f32.mrf.mxu3 }
 0x42c   :  { %v423_v30 = vpop.f32.mrf.mxu0 }
 0x42d   :  { %v424_v31 = vadd.f32 %v423_v30, %v363_v29 }
 0x42f   :  { %427 = vst [vmem:[%s694_s3] sm:$0xff] %v424_v31 }
 0x434   :  { %v425_v32 = vpop.f32.mrf.mxu0 }
 0x435   :  { %432 = vsyncpa [#allocation3], 1 }
 0x436   :  { %433 = vsyncpa [#allocation5], 1 }

</bundles_post_ra>
